<compile_context>
chip_gen: v7x
topology: tpu7x:2x2x1
jax: 0.10.0
libtpu: 0.0.40
codegen_flags: <defaults>
</compile_context>

<pallas_src>
import functools

import jax
import jax.numpy as jnp
from jax import lax
from jax.experimental import pallas as pl
from jax.experimental.pallas import tpu as pltpu


def mda_kernel(x_ref, w_ref, b_ref, out_ref, *, feature_dim, temporal_window):
    # x_ref: (1, B, T, D) block for the current F_block.
    x = x_ref[0]
    if x.dtype != jnp.float32:
        x = x.astype(jnp.float32)
    B, T, D = x.shape

    # F.normalize(F_block): L2 along dim=1 (temporal axis), eps = 1e-12.
    # x / max(sqrt(s), eps) == x * rsqrt(max(s, eps^2)); rsqrt is an EUP op.
    sumsq = jnp.sum(x * x, axis=1, keepdims=True)                 # (B, 1, D)
    xn = x * lax.rsqrt(jnp.maximum(sumsq, 1e-24))

    # Q/K/V projections on the flattened (B*T, D) LHS.  w_ref: (3, D, D)
    # pre-transposed weights, b_ref: (3, 1, D) biases; leading-dim ref
    # indexing is a pure address offset (no lane slicing needed).
    xf = xn.reshape(B * T, D)

    def proj(i):
        y = jnp.dot(xf, w_ref[i], preferred_element_type=jnp.float32)
        return (y + b_ref[i]).reshape(B, T, D)

    Q, K, V = proj(0), proj(1), proj(2)

    # beta_t = bmm(Q, K^T) / sqrt(feature_dim)                    -> (B, T, T)
    beta_t = jnp.einsum('btd,bsd->bts', Q, K,
                        preferred_element_type=jnp.float32)
    beta_t = beta_t * (1.0 / (feature_dim ** 0.5))
    # softmax over dim=1 (first T axis, i.e. column-wise)
    e_t = jnp.exp(beta_t - jnp.max(beta_t, axis=1, keepdims=True))
    A_t = e_t * pl.reciprocal(jnp.sum(e_t, axis=1, keepdims=True), approx=False)

    # beta_f = bmm(K^T, Q) / sqrt(temporal_window)                -> (B, D, D)
    beta_f = jnp.einsum('btd,bte->bde', K, Q,
                        preferred_element_type=jnp.float32)
    beta_f = beta_f * (1.0 / (temporal_window ** 0.5))
    # softmax over dim=0 (batch axis — as written in the PyTorch module)
    e_f = jnp.exp(beta_f - jnp.max(beta_f, axis=0, keepdims=True))
    A_f = e_f * pl.reciprocal(jnp.sum(e_f, axis=0, keepdims=True), approx=False)

    # V_t = bmm(A_t, V);  V_tf = bmm(V_t, A_f)                    -> (B, T, D)
    V_t = jnp.einsum('bts,bsd->btd', A_t, V,
                     preferred_element_type=jnp.float32)
    V_tf = jnp.einsum('btd,bde->bte', V_t, A_f,
                      preferred_element_type=jnp.float32)

    out_ref[0] = V_tf.astype(out_ref.dtype)


def multi_domain_attention_stacked(xs, w_qkv, b_qkv):
    """xs: (N, B, T, D) stack of independent F_blocks.
    w_qkv: (3, D, D) pre-transposed [Wq, Wk, Wv]; b_qkv: (3, 1, D) biases."""
    N, B, T, D = xs.shape
    kernel = functools.partial(mda_kernel, feature_dim=D, temporal_window=T)
    grid_spec = pltpu.PrefetchScalarGridSpec(
        num_scalar_prefetch=0,
        grid=(N,),
        in_specs=[
            pl.BlockSpec((1, B, T, D), lambda n: (n, 0, 0, 0)),
            pl.BlockSpec((3, D, D), lambda n: (0, 0, 0)),   # weights resident
            pl.BlockSpec((3, 1, D), lambda n: (0, 0, 0)),   # biases resident
        ],
        out_specs=pl.BlockSpec((1, B, T, D), lambda n: (n, 0, 0, 0)),
    )
    return pl.pallas_call(
        kernel,
        out_shape=jax.ShapeDtypeStruct((N, B, T, D), xs.dtype),
        grid_spec=grid_spec,
        compiler_params=pltpu.CompilerParams(
            dimension_semantics=("parallel",)),   # v7x: split blocks over 2 TCs
    )(xs, w_qkv, b_qkv)


def multi_domain_attention(x, wq_t, bq, wk_t, bk, wv_t, bv):
    """Single F_block forward (matches MultiDomainAttention.forward).
    x: (B, T, D). wX_t: (D, D) pre-transposed Linear weights. bX: (1, D)."""
    w_qkv = jnp.stack([wq_t, wk_t, wv_t])    # (3, D, D) packed on host/XLA side
    b_qkv = jnp.stack([bq, bk, bv])          # (3, 1, D)
    return multi_domain_attention_stacked(x[None], w_qkv, b_qkv)[0]


def mda_reference(x, wq_t, bq, wk_t, bk, wv_t, bv):
    """Pure-JAX reference mirroring the PyTorch forward exactly."""
    B, T, D = x.shape
    norm = jnp.sqrt(jnp.sum(x * x, axis=1, keepdims=True))
    xn = x / jnp.maximum(norm, 1e-12)
    Q = xn @ wq_t + bq[None]
    K = xn @ wk_t + bk[None]
    V = xn @ wv_t + bv[None]
    beta_t = jnp.einsum('btd,bsd->bts', Q, K) / (D ** 0.5)
    A_t = jax.nn.softmax(beta_t, axis=1)
    beta_f = jnp.einsum('btd,bte->bde', K, Q) / (T ** 0.5)
    A_f = jax.nn.softmax(beta_f, axis=0)
    V_t = jnp.einsum('bts,bsd->btd', A_t, V)
    return jnp.einsum('btd,bde->bte', V_t, A_f)


if __name__ == "__main__":
    B, T, D = 2, 8, 32            # batch, temporal_window, feature_dim
    N = 4                         # number of independent F_blocks (stacked path)
    key = jax.random.PRNGKey(0)
    kx, ks, kq, kbq, kk, kbk, kv, kbv = jax.random.split(key, 8)

    x = jax.random.normal(kx, (B, T, D), dtype=jnp.float32)
    xs = jax.random.normal(ks, (N, B, T, D), dtype=jnp.float32)

    # Deterministic Linear params (PyTorch-style uniform(-1/sqrt(D), 1/sqrt(D))),
    # stored pre-transposed as (D_in, D_out); biases as (1, D).
    bound = 1.0 / (D ** 0.5)
    init_w = lambda k: jax.random.uniform(k, (D, D), jnp.float32, -bound, bound)
    init_b = lambda k: jax.random.uniform(k, (1, D), jnp.float32, -bound, bound)
    wq_t, bq = init_w(kq), init_b(kbq)
    wk_t, bk = init_w(kk), init_b(kbk)
    wv_t, bv = init_w(kv), init_b(kbv)

    # Single F_block (module forward).
    out = multi_domain_attention(x, wq_t, bq, wk_t, bk, wv_t, bv)
    out = jax.block_until_ready(out)
    ref = mda_reference(x, wq_t, bq, wk_t, bk, wv_t, bv)
    assert out.shape == (B, T, D)
    assert jnp.allclose(out, ref, atol=1e-4, rtol=1e-4), "single-block mismatch"

    # Stacked path: N independent F_blocks in one gridded pallas_call.
    w_qkv = jnp.stack([wq_t, wk_t, wv_t])
    b_qkv = jnp.stack([bq, bk, bv])
    outs = multi_domain_attention_stacked(xs, w_qkv, b_qkv)
    outs = jax.block_until_ready(outs)
    refs = jax.vmap(
        lambda xb: mda_reference(xb, wq_t, bq, wk_t, bk, wv_t, bv))(xs)
    assert outs.shape == (N, B, T, D)
    assert jnp.allclose(outs, refs, atol=1e-4, rtol=1e-4), "stacked mismatch"

    print("KERNEL_OK")
</pallas_src>

<mosaic_0001>
module attributes {stable_mosaic.version = 11 : i64} {
  func.func @mda_kernel(%arg0: i32, %arg1: memref<1x2x8x32xf32, #tpu.memory_space<vmem>>, %arg2: memref<3x32x32xf32, #tpu.memory_space<vmem>>, %arg3: memref<3x1x32xf32, #tpu.memory_space<vmem>>, %arg4: memref<1x2x8x32xf32, #tpu.memory_space<vmem>>) attributes {dimension_semantics = [#tpu.dimension_semantics<parallel>], iteration_bounds = array<i64: 1>, scalar_prefetch = 0 : i64, scratch_operands = 0 : i64, tpu.core_type = #tpu.core_type<tc>, window_params = [{transform_indices = @transform_0, window_bounds = array<i64: 1, 2, 8, 32>}, {pipeline_mode = #tpu.pipeline_mode<synchronous>, transform_indices = @transform_1, window_bounds = array<i64: 3, 32, 32>}, {pipeline_mode = #tpu.pipeline_mode<synchronous>, transform_indices = @transform_2, window_bounds = array<i64: 3, 1, 32>}, {transform_indices = @transform_3, window_bounds = array<i64: 1, 2, 8, 32>}]} {
    %c0 = arith.constant 0 : index
    %c0_0 = arith.constant 0 : index
    %c0_1 = arith.constant 0 : index
    %c0_2 = arith.constant 0 : index
    %0 = vector.load %arg1[%c0, %c0_0, %c0_1, %c0_2] : memref<1x2x8x32xf32, #tpu.memory_space<vmem>>, vector<1x2x8x32xf32>
    %1 = vector.shape_cast %0 : vector<1x2x8x32xf32> to vector<2x8x32xf32>
    %2 = arith.mulf %1, %1 : vector<2x8x32xf32>
    %cst = arith.constant dense<0.000000e+00> : vector<2x32xf32>
    %3 = vector.multi_reduction <add>, %2, %cst [1] : vector<2x8x32xf32> to vector<2x32xf32>
    %4 = vector.shape_cast %3 : vector<2x32xf32> to vector<2x1x32xf32>
    %cst_3 = arith.constant 1.000000e-24 : f32
    %5 = vector.broadcast %cst_3 : f32 to vector<2x1x32xf32>
    %6 = arith.maximumf %4, %5 : vector<2x1x32xf32>
    %7 = math.rsqrt %6 : vector<2x1x32xf32>
    %8 = vector.broadcast %7 : vector<2x1x32xf32> to vector<2x8x32xf32>
    %9 = arith.mulf %1, %8 : vector<2x8x32xf32>
    %10 = vector.shape_cast %9 : vector<2x8x32xf32> to vector<16x32xf32>
    %c0_4 = arith.constant 0 : index
    %c0_5 = arith.constant 0 : index
    %c0_6 = arith.constant 0 : index
    %11 = vector.load %arg2[%c0_4, %c0_5, %c0_6] : memref<3x32x32xf32, #tpu.memory_space<vmem>>, vector<1x32x32xf32>
    %12 = vector.shape_cast %11 : vector<1x32x32xf32> to vector<32x32xf32>
    %cst_7 = arith.constant dense<0.000000e+00> : vector<16x32xf32>
    %13 = tpu.matmul %10, %12, %cst_7 {dimension_numbers = #tpu.dot_dimension_numbers<[1], [0], [0], [1], [0, 0, 1, 1], [], []>} : vector<16x32xf32>, vector<32x32xf32>, vector<16x32xf32> -> vector<16x32xf32>
    %c0_8 = arith.constant 0 : index
    %c0_9 = arith.constant 0 : index
    %c0_10 = arith.constant 0 : index
    %14 = vector.load %arg3[%c0_8, %c0_9, %c0_10] : memref<3x1x32xf32, #tpu.memory_space<vmem>>, vector<1x1x32xf32>
    %15 = vector.shape_cast %14 : vector<1x1x32xf32> to vector<1x32xf32>
    %16 = vector.broadcast %15 : vector<1x32xf32> to vector<16x32xf32>
    %17 = arith.addf %13, %16 : vector<16x32xf32>
    %18 = vector.shape_cast %17 : vector<16x32xf32> to vector<2x8x32xf32>
    %c1 = arith.constant 1 : index
    %c0_11 = arith.constant 0 : index
    %c0_12 = arith.constant 0 : index
    %19 = vector.load %arg2[%c1, %c0_11, %c0_12] : memref<3x32x32xf32, #tpu.memory_space<vmem>>, vector<1x32x32xf32>
    %20 = vector.shape_cast %19 : vector<1x32x32xf32> to vector<32x32xf32>
    %cst_13 = arith.constant dense<0.000000e+00> : vector<16x32xf32>
    %21 = tpu.matmul %10, %20, %cst_13 {dimension_numbers = #tpu.dot_dimension_numbers<[1], [0], [0], [1], [0, 0, 1, 1], [], []>} : vector<16x32xf32>, vector<32x32xf32>, vector<16x32xf32> -> vector<16x32xf32>
    %c1_14 = arith.constant 1 : index
    %c0_15 = arith.constant 0 : index
    %c0_16 = arith.constant 0 : index
    %22 = vector.load %arg3[%c1_14, %c0_15, %c0_16] : memref<3x1x32xf32, #tpu.memory_space<vmem>>, vector<1x1x32xf32>
    %23 = vector.shape_cast %22 : vector<1x1x32xf32> to vector<1x32xf32>
    %24 = vector.broadcast %23 : vector<1x32xf32> to vector<16x32xf32>
    %25 = arith.addf %21, %24 : vector<16x32xf32>
    %26 = vector.shape_cast %25 : vector<16x32xf32> to vector<2x8x32xf32>
    %c2 = arith.constant 2 : index
    %c0_17 = arith.constant 0 : index
    %c0_18 = arith.constant 0 : index
    %27 = vector.load %arg2[%c2, %c0_17, %c0_18] : memref<3x32x32xf32, #tpu.memory_space<vmem>>, vector<1x32x32xf32>
    %28 = vector.shape_cast %27 : vector<1x32x32xf32> to vector<32x32xf32>
    %cst_19 = arith.constant dense<0.000000e+00> : vector<16x32xf32>
    %29 = tpu.matmul %10, %28, %cst_19 {dimension_numbers = #tpu.dot_dimension_numbers<[1], [0], [0], [1], [0, 0, 1, 1], [], []>} : vector<16x32xf32>, vector<32x32xf32>, vector<16x32xf32> -> vector<16x32xf32>
    %c2_20 = arith.constant 2 : index
    %c0_21 = arith.constant 0 : index
    %c0_22 = arith.constant 0 : index
    %30 = vector.load %arg3[%c2_20, %c0_21, %c0_22] : memref<3x1x32xf32, #tpu.memory_space<vmem>>, vector<1x1x32xf32>
    %31 = vector.shape_cast %30 : vector<1x1x32xf32> to vector<1x32xf32>
    %32 = vector.broadcast %31 : vector<1x32xf32> to vector<16x32xf32>
    %33 = arith.addf %29, %32 : vector<16x32xf32>
    %34 = vector.shape_cast %33 : vector<16x32xf32> to vector<2x8x32xf32>
    "tpu.trace_start"() <{level = 10 : i32, message = "btd,bsd->bts"}> : () -> ()
    %cst_23 = arith.constant dense<0.000000e+00> : vector<2x8x8xf32>
    %35 = tpu.matmul %18, %26, %cst_23 {dimension_numbers = #tpu.dot_dimension_numbers<[2], [2], [1], [1], [0, 0, 0, 1, 1, 1], [0], [0]>} : vector<2x8x32xf32>, vector<2x8x32xf32>, vector<2x8x8xf32> -> vector<2x8x8xf32>
    "tpu.trace_stop"() : () -> ()
    %cst_24 = arith.constant 0.176776692 : f32
    %36 = vector.broadcast %cst_24 : f32 to vector<2x8x8xf32>
    %37 = arith.mulf %35, %36 : vector<2x8x8xf32>
    %cst_25 = arith.constant dense<0xFF800000> : vector<2x8xf32>
    %38 = vector.multi_reduction <maximumf>, %37, %cst_25 [1] : vector<2x8x8xf32> to vector<2x8xf32>
    %39 = vector.shape_cast %38 : vector<2x8xf32> to vector<2x1x8xf32>
    %40 = vector.broadcast %39 : vector<2x1x8xf32> to vector<2x8x8xf32>
    %41 = arith.subf %37, %40 : vector<2x8x8xf32>
    %42 = math.exp %41 : vector<2x8x8xf32>
    %cst_26 = arith.constant dense<0.000000e+00> : vector<2x8xf32>
    %43 = vector.multi_reduction <add>, %42, %cst_26 [1] : vector<2x8x8xf32> to vector<2x8xf32>
    %44 = vector.shape_cast %43 : vector<2x8xf32> to vector<2x1x8xf32>
    %45 = tpu.reciprocal %44 : vector<2x1x8xf32> -> vector<2x1x8xf32>
    %46 = vector.broadcast %45 : vector<2x1x8xf32> to vector<2x8x8xf32>
    %47 = arith.mulf %42, %46 : vector<2x8x8xf32>
    "tpu.trace_start"() <{level = 10 : i32, message = "btd,bte->bde"}> : () -> ()
    %cst_27 = arith.constant dense<0.000000e+00> : vector<2x32x32xf32>
    %48 = tpu.matmul %26, %18, %cst_27 {dimension_numbers = #tpu.dot_dimension_numbers<[1], [1], [2], [2], [0, 0, 0, 2, 1, 2], [0], [0]>} : vector<2x8x32xf32>, vector<2x8x32xf32>, vector<2x32x32xf32> -> vector<2x32x32xf32>
    "tpu.trace_stop"() : () -> ()
    %cst_28 = arith.constant 0.353553385 : f32
    %49 = vector.broadcast %cst_28 : f32 to vector<2x32x32xf32>
    %50 = arith.mulf %48, %49 : vector<2x32x32xf32>
    %cst_29 = arith.constant dense<0xFF800000> : vector<32x32xf32>
    %51 = vector.multi_reduction <maximumf>, %50, %cst_29 [0] : vector<2x32x32xf32> to vector<32x32xf32>
    %52 = vector.shape_cast %51 : vector<32x32xf32> to vector<1x32x32xf32>
    %53 = vector.broadcast %52 : vector<1x32x32xf32> to vector<2x32x32xf32>
    %54 = arith.subf %50, %53 : vector<2x32x32xf32>
    %55 = math.exp %54 : vector<2x32x32xf32>
    %cst_30 = arith.constant dense<0.000000e+00> : vector<32x32xf32>
    %56 = vector.multi_reduction <add>, %55, %cst_30 [0] : vector<2x32x32xf32> to vector<32x32xf32>
    %57 = vector.shape_cast %56 : vector<32x32xf32> to vector<1x32x32xf32>
    %58 = tpu.reciprocal %57 : vector<1x32x32xf32> -> vector<1x32x32xf32>
    %59 = vector.broadcast %58 : vector<1x32x32xf32> to vector<2x32x32xf32>
    %60 = arith.mulf %55, %59 : vector<2x32x32xf32>
    "tpu.trace_start"() <{level = 10 : i32, message = "bts,bsd->btd"}> : () -> ()
    %cst_31 = arith.constant dense<0.000000e+00> : vector<2x8x32xf32>
    %61 = tpu.matmul %47, %34, %cst_31 {dimension_numbers = #tpu.dot_dimension_numbers<[2], [1], [1], [2], [0, 0, 0, 1, 1, 2], [0], [0]>} : vector<2x8x8xf32>, vector<2x8x32xf32>, vector<2x8x32xf32> -> vector<2x8x32xf32>
    "tpu.trace_stop"() : () -> ()
    "tpu.trace_start"() <{level = 10 : i32, message = "btd,bde->bte"}> : () -> ()
    %cst_32 = arith.constant dense<0.000000e+00> : vector<2x8x32xf32>
    %62 = tpu.matmul %61, %60, %cst_32 {dimension_numbers = #tpu.dot_dimension_numbers<[2], [1], [1], [2], [0, 0, 0, 1, 1, 2], [0], [0]>} : vector<2x8x32xf32>, vector<2x32x32xf32>, vector<2x8x32xf32> -> vector<2x8x32xf32>
    "tpu.trace_stop"() : () -> ()
    %c0_33 = arith.constant 0 : index
    %c0_34 = arith.constant 0 : index
    %c0_35 = arith.constant 0 : index
    %c0_36 = arith.constant 0 : index
    %63 = vector.load %arg4[%c0_33, %c0_34, %c0_35, %c0_36] : memref<1x2x8x32xf32, #tpu.memory_space<vmem>>, vector<1x2x8x32xf32>
    %64 = vector.shape_cast %63 : vector<1x2x8x32xf32> to vector<2x8x32xf32>
    %65 = vector.shape_cast %62 : vector<2x8x32xf32> to vector<1x2x8x32xf32>
    tpu.vector_store %arg4[%c0_33, %c0_34, %c0_35, %c0_36], %65 {strides = array<i32>} : memref<1x2x8x32xf32, #tpu.memory_space<vmem>>, vector<1x2x8x32xf32>,
    return
  }
  func.func @transform_0(%arg0: i32) -> (i32, i32, i32, i32) {
    %c0_i32 = arith.constant 0 : i32
    %c0_i32_0 = arith.constant 0 : i32
    %c0_i32_1 = arith.constant 0 : i32
    %c0_i32_2 = arith.constant 0 : i32
    return %arg0, %c0_i32, %c0_i32_0, %c0_i32_1 : i32, i32, i32, i32
  }
  func.func @transform_1(%arg0: i32) -> (i32, i32, i32) {
    %c0_i32 = arith.constant 0 : i32
    %c0_i32_0 = arith.constant 0 : i32
    %c0_i32_1 = arith.constant 0 : i32
    %c0_i32_2 = arith.constant 0 : i32
    return %c0_i32, %c0_i32_0, %c0_i32_1 : i32, i32, i32
  }
  func.func @transform_2(%arg0: i32) -> (i32, i32, i32) {
    %c0_i32 = arith.constant 0 : i32
    %c0_i32_0 = arith.constant 0 : i32
    %c0_i32_1 = arith.constant 0 : i32
    %c0_i32_2 = arith.constant 0 : i32
    return %c0_i32, %c0_i32_0, %c0_i32_1 : i32, i32, i32
  }
  func.func @transform_3(%arg0: i32) -> (i32, i32, i32, i32) {
    %c0_i32 = arith.constant 0 : i32
    %c0_i32_0 = arith.constant 0 : i32
    %c0_i32_1 = arith.constant 0 : i32
    %c0_i32_2 = arith.constant 0 : i32
    return %arg0, %c0_i32, %c0_i32_0, %c0_i32_1 : i32, i32, i32, i32
  }
}

</mosaic_0001>

<bundles_post_ra>
// kernel: tpu_custom_call.1
= control target key start
LH: loop header
LB: loop body
LE: loop exit
PB: predicated region body
PF: predicated region fallthrough
CT: control target
= control target key end

     0   :  { %8 = vsyncpa [#allocation3], 0  ;;  %s1631_s0 = inlined_call_operand.hbm [shape: f32[1,2,8,32], index: 0, kind: input, shape index: {}]   ;;  %s1632_s1 = inlined_call_operand.hbm [shape: f32[3,32,32], index: 1, kind: input, shape index: {}]   ;;  %s1633_s2 = inlined_call_operand.vmem [shape: f32[3,1,32], index: 2, kind: input, shape index: {}]   ;;  %s1634_s3 = inlined_call_operand.hbm [shape: f32[1,2,8,32], index: 3, kind: output, shape index: {}]  }
   0x1   :  { %9 = vsyncpa [#allocation6], 0 }
   0x2   :  { %10 = vsyncpa [#allocation4], 0  ;;  %s1483_s12 = smov [#allocation2]   ;;  %s1411_s16 = scalar_lea.hbm %s1631_s0, 256 }
   0x3   :  { %s16_s13 = sshll.u32 %s1483_s12, 4  ;;  %p1412_p0 = scmp.ne.s32.totalorder %s1631_s0, %s1411_s16  ;;  %s17_s13 = int_to_ptr.vmem [resolvable:$true] %s16_s13 }
   0x4   :  { %p1415_p1 = scmp.lt.u32.totalorder %s1411_s16, %s1631_s0 }
   0x6   :  { %p1417_p2 = pnand %p1415_p1, %p1412_p0 }
   0x8   :  { %1420 = shalt.err (!%p1417_p2)
}
   0x9   :  { %s1421_s21 = scalar_lea.vmem %s17_s13, 256  ;;  %p1426_p4 = scmp.lt.s32.totalorder %s17_s13, %s17_s13 }
   0xa   :  { %p1422_p3 = scmp.ne.s32.totalorder %s17_s13, %s1421_s21  ;;  %p1427_p5 = scmp.lt.s32.totalorder %s1421_s21, %s1421_s21 }
   0xc   :  { %p1428_p6 = por %p1427_p5, %p1426_p4 }
   0xe   :  { %p1429_p7 = pnand %p1428_p6, %p1422_p3 }
  0x10   :  { %1432 = shalt.err (!%p1429_p7)
}
  0x11   :  { %s1484_s22 = smov 128   ;;  %s1485_s23 = smov 8  }
  0x12   :  { %22 = dma.hbm_to_vmem [thread:$0]  %s1631_s0, 256, %s17_s13, [#allocation3], %s1484_s22, %s1484_s22, %s1485_s23  }
  0x13   :  { %s1486_s26 = smov [#allocation5]   ;;  %s1433_s30 = scalar_lea.hbm %s1632_s1, 1536 }
  0x14   :  { %s28_s27 = sshll.u32 %s1486_s26, 4  ;;  %p1434_p8 = scmp.ne.s32.totalorder %s1632_s1, %s1433_s30  ;;  %s29_s27 = int_to_ptr.vmem [resolvable:$true] %s28_s27 }
  0x15   :  { %p1437_p9 = scmp.lt.u32.totalorder %s1433_s30, %s1632_s1 }
  0x17   :  { %p1439_p10 = pnand %p1437_p9, %p1434_p8 }
  0x19   :  { %1442 = shalt.err (!%p1439_p10)
}
  0x1a   :  { %s1443_s8 = scalar_lea.vmem %s29_s27, 1536  ;;  %p1448_p12 = scmp.lt.s32.totalorder %s29_s27, %s29_s27 }
  0x1b   :  { %p1444_p11 = scmp.ne.s32.totalorder %s29_s27, %s1443_s8  ;;  %p1449_p13 = scmp.lt.s32.totalorder %s1443_s8, %s1443_s8 }
  0x1d   :  { %p1450_p0 = por %p1449_p13, %p1448_p12 }
  0x1f   :  { %p1451_p1 = pnand %p1450_p0, %p1444_p11 }
  0x21   :  { %1454 = shalt.err (!%p1451_p1)
}
  0x22   :  { %34 = dma.hbm_to_vmem [thread:$0]  %s1632_s1, 1536, %s29_s27, [#allocation6], %s1484_s22, %s1484_s22, %s1485_s23  }
  0x23   :  { %1477 = dma.done.wait [#allocation3], 256  }
  0x24   :  { %1478 = vsyncadd [#allocation3], 4294967040 }
  0x25   :  { %1479 = dma.done.wait [#allocation6], 1536  }
  0x26   :  { %1480 = vsyncadd [#allocation6], 4294965760  ;;  %v161_v0 = vld [vmem:[#allocation5 + $0x20] sm:$0xff]  ;;  %v162_v1 = vld [vmem:[#allocation5 + $0x28] sm:$0xff]  ;;  %vm47_vm0 = vcmask 261120   ;;  %v1487_v42 = vmov 0.0  }
  0x27   :  { %v68_v2 = vld [vmem:[#allocation5] sm:$0xff]  ;;  %v1339_v3 = vpack.c.bf16 %v162_v1, %v161_v0  ;;  %v69_v4 = vld [vmem:[#allocation5 + $0x8] sm:$0xff]  ;;  %v163_v5 = vld [vmem:[#allocation5 + $0x30] sm:$0xff]  ;;  %vm1488_vm1 = vmmov 0   ;;  %vm490_vm2 = vcmask 64512  }
  0x28   :  { %v164_v6 = vld [vmem:[#allocation5 + $0x38] sm:$0xff]  ;;  %v1331_v7 = vpack.c.bf16 %v69_v4, %v68_v2  ;;  %v70_v9 = vld [vmem:[#allocation5 + $0x10] sm:$0xff]  ;;  %v249_v15 = vld [vmem:[#allocation5 + $0x40] sm:$0xff] }
  0x29   :  { %v1343_v8 = vpack.c.bf16 %v164_v6, %v163_v5  ;;  %v71_v10 = vld [vmem:[#allocation5 + $0x18] sm:$0xff]  ;;  %v43_v11 = vld [vmem:[#allocation2] sm:$0xff]  ;;  %1340 = vmatprep.subr.bf16.mxu1 %v1339_v3  ;;  %v250_v16 = vld [vmem:[#allocation5 + $0x48] sm:$0xff] }
  0x2a   :  { %v1335_v12 = vpack.c.bf16 %v71_v10, %v70_v9  ;;  %v45_v13 = vmul.f32 %v43_v11, %v43_v11  ;;  %v44_v14 = vld [vmem:[#allocation2 + $0x8] sm:$0xff]  ;;  %1342 = vmatpush3.bf16.msra.mxu1 %v1339_v3  ;;  %1332 = vmatprep.subr.bf16.mxu0 %v1331_v7  ;;  %v1347_v21 = vpack.c.bf16 %v250_v16, %v249_v15  ;;  %v251_v39 = vld [vmem:[#allocation5 + $0x50] sm:$0xff] }
  0x2b   :  { %v46_v17 = vmul.f32 %v44_v14, %v44_v14  ;;  %1334 = vmatpush3.bf16.msra.mxu0 %v1331_v7  ;;  %1344 = vmatprep.subr.bf16.mxu1 %v1343_v8  ;;  %v252_v40 = vld [vmem:[#allocation5 + $0x58] sm:$0xff]  ;;  %v1171_v43 = vld [vmem:[%s1633_s2 + $0x1] ss:$0 sm:$0xff]  ;;  %v1167_v44 = vld [vmem:[%s1633_s2] ss:$0 sm:$0xff] }
  0x2c   :  { %v48_v18 = vsel %vm47_vm0, %v45_v13, 0.0  ;;  %1336 = vmatprep.subr.bf16.mxu0 %v1335_v12  ;;  %v1351_v41 = vpack.c.bf16 %v252_v40, %v251_v39  ;;  %v1175_v57 = vld [vmem:[%s1633_s2 + $0x2] ss:$0 sm:$0xff]  ;;  %s1490_s2 = smov [#allocation7]  }
  0x2d   :  { %v49_v19 = vrot.slane %v48_v18, 4  ;;  %v55_v20 = vsel %vm47_vm0, %v46_v17, 0.0  ;;  %s1154_s15 = sshll.u32 %s1490_s2, 4  ;;  %s1155_s15 = int_to_ptr.vmem [resolvable:$true] %s1154_s15 }
  0x2e   :  { %v56_v22 = vrot.slane %v55_v20, 4  ;;  %1346 = vmatpush3.bf16.msra.mxu1 %v1343_v8  ;;  %s1455_s16 = scalar_lea.vmem %s1155_s15, 256  ;;  %p1460_p3 = scmp.lt.s32.totalorder %s1155_s15, %s1155_s15 }
  0x2f   :  { %v50_v23 = vadd.f32 %v49_v19, %v48_v18  ;;  %1338 = vmatpush3.bf16.msra.mxu0 %v1335_v12  ;;  %1273 = vmatprep.subr.mxu1 %v1487_v42  ;;  %p1456_p2 = scmp.ne.s32.totalorder %s1155_s15, %s1455_s16  ;;  %p1461_p4 = scmp.lt.s32.totalorder %s1455_s16, %s1455_s16 }
  0x30   :  { %v57_v24 = vadd.f32 %v56_v22, %v55_v20  ;;  %1348 = vmatprep.subr.bf16.mxu0 %v1347_v21 }
  0x31   :  { %v51_v25 = vrot.slane %v50_v23, 2  ;;  %p1462_p5 = por %p1461_p4, %p1460_p3 }
  0x32   :  { %v58_v26 = vrot.slane %v57_v24, 2 }
  0x33   :  { %v52_v27 = vadd.f32 %v51_v25, %v50_v23  ;;  %p1463_p6 = pnand %p1462_p5, %p1456_p2 }
  0x34   :  { %v59_v28 = vadd.f32 %v58_v26, %v57_v24 }
  0x35   :  { %v53_v29 = vrot.slane %v52_v27, 1 }
  0x36   :  { %v60_v30 = vrot.slane %v59_v28, 1 }
  0x37   :  { %v54_v31 = vadd.f32 %v53_v29, %v52_v27 }
  0x38   :  { %v61_v32 = vadd.f32 %v60_v30, %v59_v28 }
  0x39   :  { %v62_v33 = vmax.f32 %v54_v31, 1e-24 }
  0x3a   :  { %v63_v34 = vmax.f32 %v61_v32, 1e-24 }
  0x3b   :  { %1375 = vrsqrt.f32 %v62_v33 }
  0x3c   :  { %1377 = vrsqrt.f32 %v63_v34 }
  0x45   :  { %v1376_v35 = vpop.eup %1375 }
  0x46   :  { %v1378_v36 = vpop.eup %1377  ;;  %v66_v37 = vmul.f32 %v1376_v35, %v43_v11 }
  0x47   :  { %v67_v38 = vmul.f32 %v1378_v36, %v44_v14 }
  0x48   :  { %1259 = vmatprep.mubr.msk.f32.mxu1 %vm47_vm0, %v66_v37  ;;  %1248 = vmatprep.mubr.msk.f32.mxu0 %vm47_vm0, %v66_v37 }
  0x49   :  { %1260 = vmatmul.mubr.msk.f32.vlgmr.msra.gmra.mrb[0].mxu1 %vm47_vm0, %v67_v38  ;;  %1249 = vmatmul.mubr.msk.f32.vlgmr.msra.gmra.mrb[0].mxu0 %vm47_vm0, %v67_v38 }
  0x4a   :  { %1350 = vmatpush3.bf16.msra.mxu0 %v1347_v21  ;;  %1270 = vmatprep.mubr.msk.f32.mxu0 %vm47_vm0, %v66_v37 }
  0x4b   :  { %1352 = vmatprep.subr.bf16.mxu0 %v1351_v41  ;;  %1275 = vmatprep.mubr.msk.f32.mxu1 %vm1488_vm1, %v1487_v42 }
  0x4e   :  { %1354 = vmatpush3.bf16.msra.mxu0 %v1351_v41 }
  0x51   :  { %1271 = vmatmul.mubr.msk.f32.vlgmr.msra.gmra.mrb[2].mxu0 %vm47_vm0, %v67_v38 }
 0x11c   :  { %v1261_v45 = vpop.f32.mrb[0].mxu1  ;;  %v1250_v46 = vpop.f32.mrb[0].mxu0 }
 0x11d   :  { %v239_v47 = vpop.f32.mrb[1].mxu1  ;;  %v151_v48 = vpop.f32.mrb[1].mxu0  ;;  %v245_v51 = vadd.f32 %v1261_v45, %v1171_v43  ;;  %v157_v52 = vadd.f32 %v1250_v46, %v1167_v44 }
 0x11e   :  { %v240_v49 = vadd.f32 %v1171_v43, %v239_v47  ;;  %v152_v50 = vadd.f32 %v1167_v44, %v151_v48  ;;  %v1489_v44 = vmov 0.0|0.0  }
 0x120   :  { %529 = vxpose.xlu0.b32.start.end [1/1] (short) (narrow) %v240_v49, 32  ;;  %1274 = vmatpush3.xpose.msk.msra.mxu1 %vm47_vm0, %v240_v49 }
 0x121   :  { %1283 = vmatprep.subr.mxu0 %v152_v50  ;;  %1278 = vmatprep.subr.mxu1 %v1487_v42 }
 0x122   :  { %1284 = vmatpush3.msra.mxu0 %v152_v50 }
 0x123   :  { %1276 = vmatmul.mubr.msk.f32.vlgmr.msra.gmra.mrb[2].mxu1 %vm47_vm0, %v152_v50  ;;  %1299 = vmatprep.subr.mxu0 %v1487_v42 }
 0x124   :  { %1279 = vmatpush3.xpose.msk.msra.mxu1 %vm47_vm0, %v245_v51  ;;  %1280 = vmatprep.mubr.msk.f32.mxu1 %vm1488_vm1, %v1487_v42  ;;  %v1272_v56 = vpop.f32.mrb[2].mxu0 }
 0x125   :  { %1291 = vmatprep.subr.mxu1 %v157_v52  ;;  %v327_v58 = vpop.f32.mrb[3].mxu0  ;;  %v333_v62 = vadd.f32 %v1272_v56, %v1175_v57 }
 0x126   :  { %v328_v60 = vadd.f32 %v1175_v57, %v327_v58 }
 0x127   :  { %1281 = vmatmul.mubr.msk.f32.vlgmr.msra.gmra.mrb[4].mxu1 %vm47_vm0, %v157_v52 }
 0x128   :  { %1292 = vmatpush3.msra.mxu1 %v157_v52 }
 0x129   :  { %1304 = vmatprep.subr.mxu1 %v1487_v42 }
 0x12d   :  { %658 = vxpose.xlu0.b32.start.end [1/1] (short) (narrow) %v245_v51, 32 }
 0x1a0   :  { %v545_v53 = vpop.trf.xlu0 }
 0x1a1   :  { %1285 = vmatprep.mubr.msk.f32.mxu0 %vm490_vm2, %v545_v53 }
 0x1a4   :  { %v546_v54 = vpop.trf.xlu0 }
 0x1a5   :  { %1286 = vmatmul.mubr.msk.f32.vlgmr.msra.gmra.mrb[4].mxu0 %vm490_vm2, %v546_v54 }
 0x1a6   :  { %1300 = vmatpush3.msra.mxu0 %v328_v60 }
 0x1a7   :  { %1355 = vmatprep.subr.bf16.mxu0 %v1489_v44 }
 0x1a8   :  { %v547_v55 = vpop.trf.xlu0 }
 0x1a9   :  { %1288 = vmatprep.mubr.msk.f32.mxu0 %vm490_vm2, %v547_v55 }
 0x1ac   :  { %v548_v59 = vpop.trf.xlu0 }
 0x1ad   :  { %1289 = vmatmul.mubr.msk.f32.gmra.mrb[6].mxu0 %vm490_vm2, %v548_v59 }
 0x1ae   :  { %1301 = vmatprep.mubr.msk.f32.mxu0 %vm1488_vm1, %v1487_v42 }
 0x1b0   :  { %v674_v61 = vpop.trf.xlu0 }
 0x1b1   :  { %1293 = vmatprep.mubr.msk.f32.mxu1 %vm490_vm2, %v674_v61 }
 0x1b4   :  { %v675_v63 = vpop.trf.xlu0 }
 0x1b5   :  { %1294 = vmatmul.mubr.msk.f32.vlgmr.msra.gmra.mrb[6].mxu1 %vm490_vm2, %v675_v63 }
 0x1b6   :  { %1305 = vmatpush3.msra.mxu1 %v333_v62 }
 0x1b7   :  { %1361 = vmatprep.subr.bf16.mxu1 %v1489_v44 }
 0x1b8   :  { %v676_v0 = vpop.trf.xlu0 }
 0x1b9   :  { %1296 = vmatprep.mubr.msk.f32.mxu1 %vm490_vm2, %v676_v0 }
 0x1bc   :  { %v677_v1 = vpop.trf.xlu0 }
 0x1bd   :  { %1297 = vmatmul.mubr.msk.f32.gmra.mrb[8].mxu1 %vm490_vm2, %v677_v1 }
 0x1be   :  { %1306 = vmatprep.mubr.msk.f32.mxu1 %vm1488_vm1, %v1487_v42 }
 0x1f6   :  { %v408_v2 = vpop.f32.mrb[2].mxu1 }
 0x1f7   :  { %v488_v3 = vmul.f32 0.17677669, %v408_v2  ;;  %v1277_v4 = vpop.f32.mrb[3].mxu1 }
 0x1f9   :  { %v491_v5 = vsel %vm490_vm2, %v488_v3, -inf }
 0x1fa   :  { %v492_v6 = vrot.slane %v491_v5, 4  ;;  %v484_v7 = vpop.f32.mrb[4].mxu1 }
 0x1fb   :  { %v489_v8 = vmul.f32 0.17677669, %v484_v7  ;;  %v1282_v9 = vpop.f32.mrb[5].mxu1 }
 0x1fc   :  { %v493_v10 = vmax.f32 %v491_v5, %v492_v6 }
 0x1fd   :  { %v498_v11 = vsel %vm490_vm2, %v489_v8, -inf }
 0x1fe   :  { %v494_v12 = vrot.slane %v493_v10, 2  ;;  %v499_v13 = vrot.slane %v498_v11, 4 }
 0x200   :  { %v495_v14 = vmax.f32 %v493_v10, %v494_v12  ;;  %v500_v15 = vmax.f32 %v498_v11, %v499_v13 }
 0x202   :  { %v496_v16 = vrot.slane %v495_v14, 1  ;;  %v501_v17 = vrot.slane %v500_v15, 2 }
 0x204   :  { %v497_v18 = vmax.f32 %v495_v14, %v496_v16  ;;  %v502_v19 = vmax.f32 %v500_v15, %v501_v17 }
 0x206   :  { %v505_v20 = vsub.f32 %v488_v3, %v497_v18  ;;  %v503_v21 = vrot.slane %v502_v19, 1 }
 0x208   :  { %v507_v22 = vmul.f32 1.442695, %v505_v20  ;;  %v504_v23 = vmax.f32 %v502_v19, %v503_v21 }
 0x20a   :  { %1379 = vpow2.f32 %v507_v22  ;;  %v506_v24 = vsub.f32 %v489_v8, %v504_v23 }
 0x20c   :  { %v509_v25 = vmul.f32 1.442695, %v506_v24 }
 0x20e   :  { %1381 = vpow2.f32 %v509_v25 }
 0x214   :  { %v1380_v26 = vpop.eup %1379 }
 0x215   :  { %v511_v27 = vsel %vm490_vm2, %v1380_v26, 0.0 }
 0x216   :  { %v512_v28 = vrot.slane %v511_v27, 4 }
 0x218   :  { %v1382_v29 = vpop.eup %1381  ;;  %v513_v30 = vadd.f32 %v512_v28, %v511_v27 }
 0x219   :  { %v518_v31 = vsel %vm490_vm2, %v1382_v29, 0.0 }
 0x21a   :  { %v514_v32 = vrot.slane %v513_v30, 2  ;;  %v519_v33 = vrot.slane %v518_v31, 4 }
 0x21c   :  { %v515_v34 = vadd.f32 %v514_v32, %v513_v30  ;;  %v520_v35 = vadd.f32 %v519_v33, %v518_v31 }
 0x21e   :  { %v516_v36 = vrot.slane %v515_v34, 1  ;;  %v521_v37 = vrot.slane %v520_v35, 2 }
 0x220   :  { %v517_v38 = vadd.f32 %v516_v36, %v515_v34  ;;  %v522_v39 = vadd.f32 %v521_v37, %v520_v35 }
 0x222   :  { %1383 = vrcp.f32 %v517_v38  ;;  %v523_v40 = vrot.slane %v522_v39, 1 }
 0x224   :  { %v524_v41 = vadd.f32 %v523_v40, %v522_v39 }
 0x226   :  { %1385 = vrcp.f32 %v524_v41 }
 0x22c   :  { %v1384_v43 = vpop.eup %1383 }
 0x22d   :  { %v527_v45 = vmul.f32 %v1384_v43, %v1380_v26 }
 0x22f   :  { %1302 = vmatmul.mubr.msk.f32.vlgmr.msra.gmra.mrb[8].mxu0 %vm490_vm2, %v527_v45 }
 0x230   :  { %v1386_v46 = vpop.eup %1385  ;;  %1317 = vmatprep.mubr.msk.f32.mxu0 %vm1488_vm1, %v1487_v42 }
 0x231   :  { %v528_v47 = vmul.f32 %v1386_v46, %v1382_v29 }
 0x233   :  { %1307 = vmatmul.mubr.msk.f32.vlgmr.msra.gmra.mrb[10].mxu1 %vm490_vm2, %v528_v47 }
 0x234   :  { %1328 = vmatprep.mubr.msk.f32.mxu1 %vm1488_vm1, %v1487_v42 }
 0x278   :  { %v1287_v48 = vpop.f32.mrb[4].mxu0 }
 0x279   :  { %v639_v49 = vpop.f32.mrb[5].mxu0  ;;  %v788_v52 = vmul.f32 0.35355338, %v1287_v48 }
 0x27a   :  { %v787_v53 = vmul.f32 0.35355338, %v639_v49 }
 0x27b   :  { %v798_v55 = vsel %vm47_vm0, %v788_v52, -inf }
 0x27c   :  { %v795_v58 = vsel %vm47_vm0, %v787_v53, -inf }
 0x280   :  { %v1290_v50 = vpop.f32.mrb[6].mxu0 }
 0x281   :  { %v649_v51 = vpop.f32.mrb[7].mxu0  ;;  %v790_v42 = vmul.f32 0.35355338, %v1290_v50 }
 0x282   :  { %v789_v4 = vmul.f32 0.35355338, %v649_v51 }
 0x283   :  { %v804_v7 = vsel %vm47_vm0, %v790_v42, -inf }
 0x284   :  { %v801_v14 = vsel %vm47_vm0, %v789_v4, -inf }
 0x288   :  { %v1295_v54 = vpop.f32.mrb[6].mxu1 }
 0x289   :  { %v792_v56 = vmul.f32 0.35355338, %v1295_v54  ;;  %v768_v57 = vpop.f32.mrb[7].mxu1 }
 0x28a   :  { %v791_v59 = vmul.f32 0.35355338, %v768_v57 }
 0x28b   :  { %v799_v60 = vsel %vm47_vm0, %v792_v56, -inf }
 0x28c   :  { %v800_v61 = vmax.f32 %v798_v55, %v799_v60  ;;  %v796_v62 = vsel %vm47_vm0, %v791_v59, -inf }
 0x28d   :  { %v797_v63 = vmax.f32 %v795_v58, %v796_v62 }
 0x28e   :  { %v808_v0 = vsub.f32 %v788_v52, %v800_v61  ;;  %v812_v1 = vsub.f32 %v792_v56, %v800_v61 }
 0x28f   :  { %v807_v2 = vsub.f32 %v787_v53, %v797_v63  ;;  %v811_v3 = vsub.f32 %v791_v59, %v797_v63 }
 0x290   :  { %v817_v5 = vmul.f32 1.442695, %v808_v0  ;;  %v825_v6 = vmul.f32 1.442695, %v812_v1  ;;  %v1298_v8 = vpop.f32.mrb[8].mxu1 }
 0x291   :  { %v815_v9 = vmul.f32 1.442695, %v807_v2  ;;  %v823_v10 = vmul.f32 1.442695, %v811_v3  ;;  %v794_v11 = vmul.f32 0.35355338, %v1298_v8 }
 0x292   :  { %1387 = vpow2.f32 %v817_v5  ;;  %v778_v12 = vpop.f32.mrb[9].mxu1 }
 0x293   :  { %1389 = vpow2.f32 %v825_v6  ;;  %v805_v13 = vsel %vm47_vm0, %v794_v11, -inf  ;;  %v793_v15 = vmul.f32 0.35355338, %v778_v12 }
 0x294   :  { %1391 = vpow2.f32 %v815_v9  ;;  %v806_v16 = vmax.f32 %v804_v7, %v805_v13 }
 0x295   :  { %1393 = vpow2.f32 %v823_v10  ;;  %v802_v17 = vsel %vm47_vm0, %v793_v15, -inf }
 0x296   :  { %v810_v18 = vsub.f32 %v790_v42, %v806_v16  ;;  %v814_v19 = vsub.f32 %v794_v11, %v806_v16  ;;  %v803_v20 = vmax.f32 %v801_v14, %v802_v17 }
 0x298   :  { %v821_v21 = vmul.f32 1.442695, %v810_v18  ;;  %v829_v22 = vmul.f32 1.442695, %v814_v19  ;;  %v809_v23 = vsub.f32 %v789_v4, %v803_v20  ;;  %v813_v24 = vsub.f32 %v793_v15, %v803_v20 }
 0x29a   :  { %1395 = vpow2.f32 %v821_v21  ;;  %v819_v25 = vmul.f32 1.442695, %v809_v23  ;;  %v827_v26 = vmul.f32 1.442695, %v813_v24 }
 0x29b   :  { %1397 = vpow2.f32 %v829_v22 }
 0x29c   :  { %v1388_v27 = vpop.eup %1387  ;;  %1399 = vpow2.f32 %v819_v25 }
 0x29d   :  { %v1390_v28 = vpop.eup %1389  ;;  %v834_v29 = vsel %vm47_vm0, %v1388_v27, 0.0  ;;  %1401 = vpow2.f32 %v827_v26 }
 0x29e   :  { %v1392_v30 = vpop.eup %1391  ;;  %v835_v31 = vsel %vm47_vm0, %v1390_v28, 0.0 }
 0x29f   :  { %v1394_v32 = vpop.eup %1393  ;;  %v836_v33 = vadd.f32 %v835_v31, %v834_v29  ;;  %v831_v34 = vsel %vm47_vm0, %v1392_v30, 0.0 }
 0x2a0   :  { %v832_v35 = vsel %vm47_vm0, %v1394_v32, 0.0 }
 0x2a1   :  { %1403 = vrcp.f32 %v836_v33  ;;  %v833_v36 = vadd.f32 %v832_v35, %v831_v34 }
 0x2a3   :  { %1405 = vrcp.f32 %v833_v36 }
 0x2a4   :  { %v1396_v37 = vpop.eup %1395 }
 0x2a5   :  { %v1398_v38 = vpop.eup %1397  ;;  %v840_v39 = vsel %vm47_vm0, %v1396_v37, 0.0 }
 0x2a6   :  { %v1400_v40 = vpop.eup %1399  ;;  %v841_v41 = vsel %vm47_vm0, %v1398_v38, 0.0 }
 0x2a7   :  { %v1402_v43 = vpop.eup %1401  ;;  %v842_v45 = vadd.f32 %v841_v41, %v840_v39  ;;  %v837_v46 = vsel %vm47_vm0, %v1400_v40, 0.0 }
 0x2a8   :  { %v838_v47 = vsel %vm47_vm0, %v1402_v43, 0.0 }
 0x2a9   :  { %1407 = vrcp.f32 %v842_v45  ;;  %v839_v48 = vadd.f32 %v838_v47, %v837_v46 }
 0x2ab   :  { %v1404_v49 = vpop.eup %1403  ;;  %1409 = vrcp.f32 %v839_v48 }
 0x2ac   :  { %v848_v50 = vmul.f32 %v1404_v49, %v1388_v27  ;;  %v852_v51 = vmul.f32 %v1404_v49, %v1390_v28 }
 0x2ad   :  { %v1406_v52 = vpop.eup %1405 }
 0x2ae   :  { %v847_v53 = vmul.f32 %v1406_v52, %v1392_v30  ;;  %v851_v54 = vmul.f32 %v1406_v52, %v1394_v32 }
 0x2b0   :  { %v1356_v55 = vpack.c.bf16 %v848_v50, %v847_v53  ;;  %v1362_v56 = vpack.c.bf16 %v852_v51, %v851_v54 }
 0x2b2   :  { %1357 = vmatpush3.bf16.msra.mxu0 %v1356_v55  ;;  %1363 = vmatpush3.bf16.msra.mxu1 %v1362_v56 }
 0x2b3   :  { %v1408_v57 = vpop.eup %1407  ;;  %1358 = vmatprep.subr.bf16.mxu0 %v1489_v44  ;;  %1364 = vmatprep.subr.bf16.mxu1 %v1489_v44 }
 0x2b4   :  { %v850_v58 = vmul.f32 %v1408_v57, %v1396_v37  ;;  %v854_v59 = vmul.f32 %v1408_v57, %v1398_v38 }
 0x2b5   :  { %v1410_v60 = vpop.eup %1409 }
 0x2b6   :  { %v849_v61 = vmul.f32 %v1410_v60, %v1400_v40  ;;  %v853_v62 = vmul.f32 %v1410_v60, %v1402_v43 }
 0x2b8   :  { %v1359_v42 = vpack.c.bf16 %v850_v58, %v849_v61  ;;  %v1365_v63 = vpack.c.bf16 %v854_v59, %v853_v62 }
 0x2ba   :  { %1360 = vmatpush3.bf16.msra.mxu0 %v1359_v42  ;;  %1366 = vmatpush3.bf16.msra.mxu1 %v1365_v63 }
 0x302   :  { %v924_v0 = vpop.f32.mrb[8].mxu0 }
 0x303   :  { %v1303_v1 = vpop.f32.mrb[9].mxu0  ;;  %1318 = vmatmul.mubr.msk.f32.vlgmr.msra.gmra.mrb[10].mxu0 %vm47_vm0, %v924_v0 }
 0x306   :  { %v997_v2 = vpop.f32.mrb[10].mxu1 }
 0x307   :  { %v1308_v3 = vpop.f32.mrb[11].mxu1  ;;  %1329 = vmatmul.mubr.msk.f32.vlgmr.msra.gmra.mrb[12].mxu1 %vm47_vm0, %v997_v2 }
 0x3d6   :  { %v1070_v4 = vpop.f32.mrb[10].mxu0 }
 0x3d7   :  { %1147 = vst.msk [vmem:[#allocation7] sm:$0xff] %vm47_vm0, %v1070_v4  ;;  %v1319_v44 = vpop.f32.mrb[11].mxu0 }
 0x3da   :  { %v1143_v5 = vpop.f32.mrb[12].mxu1 }
 0x3db   :  { %1148 = vst.msk [vmem:[#allocation7 + $0x8] sm:$0xff] %vm47_vm0, %v1143_v5  ;;  %v1330_v6 = vpop.f32.mrb[13].mxu1 }
 0x3dc   :  { %1466 = shalt.err (!%p1463_p6)
}
 0x3dd   :  { %s1467_s19 = scalar_lea.hbm %s1634_s3, 256 }
 0x3de   :  { %p1468_p7 = scmp.ne.s32.totalorder %s1634_s3, %s1467_s19  ;;  %p1471_p8 = scmp.lt.u32.totalorder %s1467_s19, %s1634_s3 }
 0x3e0   :  { %p1473_p9 = pnand %p1471_p8, %p1468_p7 }
 0x3e2   :  { %1476 = shalt.err (!%p1473_p9)
}
 0x3e3   :  { %1160 = dma.vmem_to_hbm [thread:$0]  %s1155_s15, 256, %s1634_s3, [#allocation4], %s1484_s22, %s1484_s22, %s1485_s23  }
 0x3e4   :  { %1481 = dma.done.wait [#allocation4], 256  }
 0x3e5   :  { %1482 = vsyncadd [#allocation4], 4294967040 }
 0x3e6   :  { %1164 = vsyncpa [#allocation3], 1 }
 0x3e7   :  { %1165 = vsyncpa [#allocation6], 1 }
 0x3e8   :  { %1166 = vsyncpa [#allocation4], 1 }

</bundles_post_ra>
